<compile_context>
chip_gen: v7x
topology: tpu7x:2x2x1
jax: 0.10.0
libtpu: 0.0.40
codegen_flags: <defaults>
</compile_context>

<pallas_src>
import functools

import jax
import jax.numpy as jnp
from jax.experimental import pallas as pl
from jax.experimental.pallas import tpu as pltpu

NEG_SLOPE = 0.01      # nn.LeakyReLU default
BN_EPS = 1e-5         # nn.BatchNorm1d default
SP_FLOOR = 1e-10      # StatsPool floor
LANE = 128
HALO_PAD = 16         # sublane-aligned halo block; covers max dilation*(K-1)=8


def _vmem_limit_bytes():
    # generation-aware VMEM budget (128 MiB on v5e/v6e, 64 MiB on v7x physical)
    try:
        cap = int(pltpu.get_tpu_info().vmem_capacity_bytes)
    except Exception:
        cap = 64 * 1024 * 1024            # safe on every generation
    return max(32 * 1024 * 1024, min((cap * 3) // 4, 112 * 1024 * 1024))


VMEM_LIMIT = _vmem_limit_bytes()


# ---------------------------------------------------------------------------
# small host-side helpers
# ---------------------------------------------------------------------------
def _cdiv(a, b):
    return -(-a // b)


def _round_up(n, m=LANE):
    return ((n + m - 1) // m) * m


def _pad_axis(a, axis, new_size):
    pad = [(0, 0)] * a.ndim
    pad[axis] = (0, new_size - a.shape[axis])
    return jnp.pad(a, pad)


def _pad_last(a, new_size):
    return _pad_axis(a, a.ndim - 1, new_size)


def _pad_vec(v, n):
    return _pad_last(v, n).reshape(1, n)


# ---------------------------------------------------------------------------
# Pallas kernels
# ---------------------------------------------------------------------------
def _tdnn_layer_kernel(*refs, K, dilation, t_tile, T_valid_out, nt, B):
    """One TDNN layer under time tiling.

    [apply previous layer's BN (scale, shift)] -> K-tap dilated conv (per-tap
    matmuls, f32 accumulation) -> +bias -> LeakyReLU -> write pre-BN activation
    tile; accumulate this layer's BN sum/sumsq across the time grid; on the
    last step emit this layer's folded BN as (scale, shift).
    """
    if K > 1:
        (x_ref, xh_ref, ss_ref, w_ref, b_ref, g_ref, be_ref,
         z_ref, st_ref, acc_ref) = refs
    else:
        (x_ref, ss_ref, w_ref, b_ref, g_ref, be_ref,
         z_ref, st_ref, acc_ref) = refs
        xh_ref = None

    t = pl.program_id(0)
    C_out = w_ref.shape[2]

    @pl.when(t == 0)
    def _init():
        acc_ref[...] = jnp.zeros_like(acc_ref)

    # previous layer's BatchNorm, folded to per-channel affine
    scale = ss_ref[0:1, :]
    shift = ss_ref[1:2, :]

    # rows of this output tile that are semantically valid (tail tiles padded)
    row0 = t * t_tile
    rmask = (jax.lax.broadcasted_iota(jnp.int32, (t_tile, 1), 0) + row0) < T_valid_out

    s_loc = jnp.zeros((1, C_out), jnp.float32)
    q_loc = jnp.zeros((1, C_out), jnp.float32)

    for b in range(B):            # B static & small: per-batch (T, C) matmuls,
        if K > 1:                 # no (B*T, C) reshape / relayout
            win = jnp.concatenate([x_ref[b], xh_ref[b]], axis=0)
        else:
            win = x_ref[b]
        win = win.astype(jnp.float32) * scale + shift     # apply previous BN (f32)
        win = win.astype(jnp.bfloat16)                    # MXU operand

        acc = jnp.zeros((t_tile, C_out), jnp.float32)
        for k in range(K):        # per-tap matmuls accumulated in f32 (no concat)
            off = k * dilation
            acc = acc + jnp.dot(win[off:off + t_tile, :], w_ref[k],
                                preferred_element_type=jnp.float32)
        h = acc + b_ref[...]
        h = jnp.where(h >= 0, h, NEG_SLOPE * h)           # LeakyReLU

        z_ref[b] = h.astype(z_ref.dtype)                  # pre-BN activation out

        hm = jnp.where(rmask, h, 0.0)                     # mask padded rows
        s_loc = s_loc + jnp.sum(hm, axis=0, keepdims=True)
        q_loc = q_loc + jnp.sum(hm * hm, axis=0, keepdims=True)

    acc_ref[0:1, :] += s_loc
    acc_ref[1:2, :] += q_loc

    @pl.when(t == nt - 1)
    def _finalize():
        n = float(B * T_valid_out)
        mu = acc_ref[0:1, :] * (1.0 / n)
        var = jnp.maximum(acc_ref[1:2, :] * (1.0 / n) - mu * mu, 0.0)
        sc = g_ref[...] * jax.lax.rsqrt(var + BN_EPS)     # EUP
        st_ref[0:1, :] = sc                               # padded gamma==0 -> 0
        st_ref[1:2, :] = be_ref[...] - mu * sc


def _stats_fc_kernel(x_ref, ss_ref, wm_ref, ws_ref, bfc_ref, o_ref,
                     sum_sc, sq_sc, *, t_tile, T_valid, nt, B):
    """[apply layer-9 BN] -> StatsPool (one-pass running sum/sumsq per batch
    row, no residual buffer) -> on the last tile: means/stds -> fc_embed."""
    t = pl.program_id(0)

    @pl.when(t == 0)
    def _init():
        sum_sc[...] = jnp.zeros_like(sum_sc)
        sq_sc[...] = jnp.zeros_like(sq_sc)

    scale = ss_ref[0:1, :]
    shift = ss_ref[1:2, :]
    row0 = t * t_tile
    rmask = (jax.lax.broadcasted_iota(jnp.int32, (t_tile, 1), 0) + row0) < T_valid

    for b in range(B):
        h = x_ref[b].astype(jnp.float32) * scale + shift
        hm = jnp.where(rmask, h, 0.0)
        sum_sc[b:b + 1, :] += jnp.sum(hm, axis=0, keepdims=True)
        sq_sc[b:b + 1, :] += jnp.sum(hm * hm, axis=0, keepdims=True)

    @pl.when(t == nt - 1)
    def _finalize():
        s = sum_sc[...]
        means = s * (1.0 / T_valid)
        # sum((x - mean)^2) = sum(x^2) - sum(x)*mean  (one pass)
        numer = jnp.maximum(sq_sc[...] - s * means, SP_FLOOR)
        stds = jnp.sqrt(numer * (1.0 / T_valid))
        # concat([means, stds], -1) @ W  ==  means @ Wm + stds @ Ws  (no concat);
        # zero-padded Wm/Ws rows keep padded channels out of the result.
        out = (jnp.dot(means.astype(jnp.bfloat16), wm_ref[...],
                       preferred_element_type=jnp.float32)
               + jnp.dot(stds.astype(jnp.bfloat16), ws_ref[...],
                         preferred_element_type=jnp.float32)
               + bfc_ref[...])
        o_ref[...] = out


# ---------------------------------------------------------------------------
# pallas_call wrappers
# ---------------------------------------------------------------------------
def _tdnn_layer_call(x, prev_ss, lp, T_valid_in, t_tile):
    B, T_alloc, C_in = x.shape
    K, d = lp["K"], lp["dilation"]
    C_out = lp["w"].shape[2]
    halo = d * (K - 1)
    assert halo <= HALO_PAD and t_tile % HALO_PAD == 0
    T_valid_out = T_valid_in - halo
    nt = _cdiv(T_valid_out, t_tile)
    need = nt * t_tile + (HALO_PAD if K > 1 else 0)
    if T_alloc < need:                        # safety net; normally never taken
        x = _pad_axis(x, 1, need)
    # +1 slack tile so the consumer's 16-row halo block never reads out of bounds
    T_out_alloc = (nt + 1) * t_tile

    in_specs = [pl.BlockSpec((B, t_tile, C_in), lambda t: (0, t, 0))]
    args = [x]
    if K > 1:
        hstep = t_tile // HALO_PAD
        in_specs.append(pl.BlockSpec((B, HALO_PAD, C_in),
                                     lambda t, s=hstep: (0, (t + 1) * s, 0)))
        args.append(x)
    in_specs += [pl.BlockSpec((2, C_in), lambda t: (0, 0)),
                 pl.BlockSpec((K, C_in, C_out), lambda t: (0, 0, 0)),
                 pl.BlockSpec((1, C_out), lambda t: (0, 0)),
                 pl.BlockSpec((1, C_out), lambda t: (0, 0)),
                 pl.BlockSpec((1, C_out), lambda t: (0, 0))]
    args += [prev_ss, lp["w"], lp["b"], lp["g"], lp["be"]]

    kernel = functools.partial(_tdnn_layer_kernel, K=K, dilation=d,
                               t_tile=t_tile, T_valid_out=T_valid_out,
                               nt=nt, B=B)
    flops = int(2 * B * nt * t_tile * K * C_in * C_out)
    bytes_accessed = int(2 * B * nt * t_tile * (C_in + C_out)
                         + 2 * lp["w"].size + 4 * (2 * C_in + 5 * C_out))
    z, ss = pl.pallas_call(
        kernel,
        grid=(nt,),
        in_specs=in_specs,
        out_specs=(pl.BlockSpec((B, t_tile, C_out), lambda t: (0, t, 0)),
                   pl.BlockSpec((2, C_out), lambda t: (0, 0))),
        out_shape=(jax.ShapeDtypeStruct((B, T_out_alloc, C_out), jnp.bfloat16),
                   jax.ShapeDtypeStruct((2, C_out), jnp.float32)),
        scratch_shapes=[pltpu.VMEM((2, C_out), jnp.float32)],
        compiler_params=pltpu.CompilerParams(
            dimension_semantics=("arbitrary",),   # time carries the BN reduction
            vmem_limit_bytes=VMEM_LIMIT),
        cost_estimate=pl.CostEstimate(flops=flops, transcendentals=int(C_out),
                                      bytes_accessed=bytes_accessed),
    )(*args)
    return z, ss, T_valid_out


def _stats_fc_call(x, prev_ss, fin, T_valid, t_tile):
    B, T_alloc, C3 = x.shape
    E = fin["wm"].shape[1]
    nt = _cdiv(T_valid, t_tile)
    kernel = functools.partial(_stats_fc_kernel, t_tile=t_tile,
                               T_valid=T_valid, nt=nt, B=B)
    flops = int(4 * B * nt * t_tile * C3 + 4 * B * C3 * E)
    bytes_accessed = int(2 * B * nt * t_tile * C3 + 4 * fin["wm"].size + 4 * B * E)
    return pl.pallas_call(
        kernel,
        grid=(nt,),
        in_specs=[pl.BlockSpec((B, t_tile, C3), lambda t: (0, t, 0)),
                  pl.BlockSpec((2, C3), lambda t: (0, 0)),
                  pl.BlockSpec((C3, E), lambda t: (0, 0)),
                  pl.BlockSpec((C3, E), lambda t: (0, 0)),
                  pl.BlockSpec((1, E), lambda t: (0, 0))],
        out_specs=pl.BlockSpec((B, E), lambda t: (0, 0)),
        out_shape=jax.ShapeDtypeStruct((B, E), jnp.float32),
        scratch_shapes=[pltpu.VMEM((B, C3), jnp.float32),
                        pltpu.VMEM((B, C3), jnp.float32)],
        compiler_params=pltpu.CompilerParams(
            dimension_semantics=("arbitrary",),
            vmem_limit_bytes=VMEM_LIMIT),
        cost_estimate=pl.CostEstimate(flops=flops, transcendentals=int(B * C3),
                                      bytes_accessed=bytes_accessed),
    )(x, prev_ss, fin["wm"], fin["ws"], fin["bfc"])


def etdnn_forward(x, kp, embed, t_tile=16):
    """x: (B, T, features) f32 -> (B, embed) f32.

    t_tile: time-tile size (multiple of 16). 16 exercises multi-step grids at the
    demo shapes; use 128-256 for production sequence lengths (sized so the
    double-buffered tiles fit under the generation-aware VMEM budget).
    """
    B, T, F = x.shape
    ctx1 = kp["ctx1"]
    T1 = T - (ctx1 - 1)
    # Host-side im2col of the first (context=5, dilation=1) conv: the 5*F taps are
    # packed contiguously and padded ONCE to a lane multiple, so the first matmul
    # contracts over 5*F real columns instead of 5 x 128 mostly-zero ones.
    x1 = jnp.concatenate([x[:, k:k + T1, :] for k in range(ctx1)], axis=-1)
    C_in1 = kp["layers"][0]["w"].shape[1]
    nt1 = _cdiv(T1, t_tile)
    h = _pad_axis(_pad_last(x1, C_in1), 1, (nt1 + 1) * t_tile).astype(jnp.bfloat16)

    # layer 1 has no preceding BatchNorm: identity (scale=1, shift=0)
    prev_ss = jnp.concatenate([jnp.ones((1, C_in1), jnp.float32),
                               jnp.zeros((1, C_in1), jnp.float32)], axis=0)

    T_valid = T1
    for lp in kp["layers"]:
        h, prev_ss, T_valid = _tdnn_layer_call(h, prev_ss, lp, T_valid, t_tile)

    out = _stats_fc_call(h, prev_ss, kp["final"], T_valid, t_tile)
    return out[:, :embed]


# ---------------------------------------------------------------------------
# parameter construction (PyTorch-like) + kernel-side packing
# ---------------------------------------------------------------------------
def _layer_cfg(features, hidden):
    return [
        (features, hidden, 5, 1),
        (hidden, hidden, 1, 1),
        (hidden, hidden, 3, 2),
        (hidden, hidden, 1, 1),
        (hidden, hidden, 3, 3),
        (hidden, hidden, 1, 1),
        (hidden, hidden, 3, 4),
        (hidden, hidden, 1, 1),
        (hidden, hidden * 3, 1, 1),
    ]


def make_params(key, features_per_frame, hidden, embed):
    params = []
    for (cin, cout, k, d) in _layer_cfg(features_per_frame, hidden):
        key, k1, k2 = jax.random.split(key, 3)
        # Conv1d weight in torch is (C_out, C_in, K); stored here as (K, C_in, C_out)
        w = jax.random.normal(k1, (k, cin, cout), jnp.float32) * 0.05
        b = jax.random.normal(k2, (cout,), jnp.float32) * 0.05
        gamma = jnp.ones((cout,), jnp.float32)
        beta = jnp.zeros((cout,), jnp.float32)
        params.append(dict(w=w, b=b, gamma=gamma, beta=beta, K=k, dilation=d))
    key, k1, k2 = jax.random.split(key, 3)
    # nn.Linear weight (E, 6H) stored transposed (6H, E)
    fc_w = jax.random.normal(k1, (hidden * 6, embed), jnp.float32) * 0.05
    fc_b = jax.random.normal(k2, (embed,), jnp.float32) * 0.05
    return params, fc_w, fc_b


def prepare_kernel_params(params, fc_w, fc_b, hidden, embed):
    layers = []
    # layer 1: repack (K, F, H) -> (K*F, H), taps contiguous, padded once to 128
    p0 = params[0]
    K1, F, H0 = p0["w"].shape
    cin1, cout1 = _round_up(K1 * F), _round_up(H0)
    w1 = _pad_axis(_pad_axis(p0["w"].reshape(K1 * F, H0), 0, cin1), 1, cout1)
    layers.append(dict(K=1, dilation=1,
                       w=w1.reshape(1, cin1, cout1).astype(jnp.bfloat16),
                       b=_pad_vec(p0["b"], cout1),
                       g=_pad_vec(p0["gamma"], cout1),   # padded gamma == 0 =>
                       be=_pad_vec(p0["beta"], cout1)))  # padded channels stay 0
    for p in params[1:]:
        K, cin, cout = p["w"].shape
        cin_p, cout_p = _round_up(cin), _round_up(cout)
        w = _pad_axis(_pad_axis(p["w"], 1, cin_p), 2, cout_p).astype(jnp.bfloat16)
        layers.append(dict(K=K, dilation=p["dilation"], w=w,
                           b=_pad_vec(p["b"], cout_p),
                           g=_pad_vec(p["gamma"], cout_p),
                           be=_pad_vec(p["beta"], cout_p)))
    c3 = hidden * 3
    c3_p, e_p = _round_up(c3), _round_up(embed)
    # fc weight rows for means / stds; zero-padded rows keep padded StatsPool
    # channels (whose std is sqrt(floor/T) != 0) out of the result.
    wm = _pad_axis(_pad_axis(fc_w[:c3], 0, c3_p), 1, e_p).astype(jnp.bfloat16)
    ws = _pad_axis(_pad_axis(fc_w[c3:], 0, c3_p), 1, e_p).astype(jnp.bfloat16)
    final = dict(wm=wm, ws=ws, bfc=_pad_vec(fc_b, e_p))
    return dict(layers=layers, final=final, ctx1=K1)


# ---------------------------------------------------------------------------
# pure-JAX reference (mirrors the PyTorch module; bf16 MXU-operand policy)
# ---------------------------------------------------------------------------
def etdnn_reference(x, params, fc_w, fc_b):
    h = x.astype(jnp.bfloat16)
    hf = None
    for p in params:
        K, d = p["K"], p["dilation"]
        T_out = h.shape[1] - d * (K - 1)
        wb = p["w"].astype(jnp.bfloat16)
        acc = sum(jnp.einsum("btc,cd->btd", h[:, k * d:k * d + T_out, :], wb[k],
                             preferred_element_type=jnp.float32)
                  for k in range(K)) + p["b"]
        acc = jnp.where(acc >= 0, acc, NEG_SLOPE * acc)
        mu = jnp.mean(acc, axis=(0, 1))
        var = jnp.mean((acc - mu) ** 2, axis=(0, 1))
        hf = (acc - mu) * jax.lax.rsqrt(var + BN_EPS) * p["gamma"] + p["beta"]
        h = hf.astype(jnp.bfloat16)
    T = hf.shape[1]
    means = jnp.mean(hf, axis=1)
    numer = jnp.sum((hf - means[:, None, :]) ** 2, axis=1)
    stds = jnp.sqrt(jnp.maximum(numer, SP_FLOOR) / T)
    c3 = fc_w.shape[0] // 2
    wf = fc_w.astype(jnp.bfloat16)
    return (jnp.dot(means.astype(jnp.bfloat16), wf[:c3],
                    preferred_element_type=jnp.float32)
            + jnp.dot(stds.astype(jnp.bfloat16), wf[c3:],
                      preferred_element_type=jnp.float32)
            + fc_b)


# ---------------------------------------------------------------------------
if __name__ == "__main__":
    B, T, F = 2, 64, 16           # batch, seq_len, features_per_frame
    HIDDEN, EMBED = 32, 16        # hidden_features, embed_features (small demo)

    key = jax.random.PRNGKey(0)
    key, kx, kparam = jax.random.split(key, 3)
    x = jax.random.normal(kx, (B, T, F), jnp.float32)
    params, fc_w, fc_b = make_params(kparam, F, HIDDEN, EMBED)
    kp = prepare_kernel_params(params, fc_w, fc_b, HIDDEN, EMBED)

    out = etdnn_forward(x, kp, EMBED, t_tile=16)
    out = jax.block_until_ready(out)

    ref = etdnn_reference(x, params, fc_w, fc_b)
    assert out.shape == (B, EMBED)
    max_diff = float(jnp.max(jnp.abs(out - ref)))
    assert jnp.allclose(out, ref, rtol=3e-2, atol=3e-2), (
        f"mismatch vs reference (max abs diff {max_diff})")

    print("KERNEL_OK")
</pallas_src>

<mosaic_0001>
module attributes {stable_mosaic.version = 11 : i64} {
  func.func @_tdnn_layer_kernel(%arg0: i32, %arg1: memref<2x16x128xbf16, #tpu.memory_space<vmem>>, %arg2: memref<2x128xf32, #tpu.memory_space<vmem>>, %arg3: memref<1x128x128xbf16, #tpu.memory_space<vmem>>, %arg4: memref<1x128xf32, #tpu.memory_space<vmem>>, %arg5: memref<1x128xf32, #tpu.memory_space<vmem>>, %arg6: memref<1x128xf32, #tpu.memory_space<vmem>>, %arg7: memref<2x16x128xbf16, #tpu.memory_space<vmem>>, %arg8: memref<2x128xf32, #tpu.memory_space<vmem>>, %arg9: memref<2x128xf32, #tpu.memory_space<vmem>>) attributes {dimension_semantics = [#tpu.dimension_semantics<arbitrary>], iteration_bounds = array<i64: 4>, scalar_prefetch = 0 : i64, scratch_operands = 1 : i64, tpu.core_type = #tpu.core_type<tc>, window_params = [{transform_indices = @transform_0, window_bounds = array<i64: 2, 16, 128>}, {pipeline_mode = #tpu.pipeline_mode<synchronous>, transform_indices = @transform_1, window_bounds = array<i64: 2, 128>}, {pipeline_mode = #tpu.pipeline_mode<synchronous>, transform_indices = @transform_2, window_bounds = array<i64: 1, 128, 128>}, {pipeline_mode = #tpu.pipeline_mode<synchronous>, transform_indices = @transform_3, window_bounds = array<i64: 1, 128>}, {pipeline_mode = #tpu.pipeline_mode<synchronous>, transform_indices = @transform_4, window_bounds = array<i64: 1, 128>}, {pipeline_mode = #tpu.pipeline_mode<synchronous>, transform_indices = @transform_5, window_bounds = array<i64: 1, 128>}, {transform_indices = @transform_6, window_bounds = array<i64: 2, 16, 128>}, {pipeline_mode = #tpu.pipeline_mode<synchronous>, transform_indices = @transform_7, window_bounds = array<i64: 2, 128>}]} {
    %c0_i32 = arith.constant 0 : i32
    %0 = arith.cmpi eq, %arg0, %c0_i32 : i32
    %1 = arith.extui %0 : i1 to i32
    %c0_i32_0 = arith.constant 0 : i32
    %2 = arith.cmpi ne, %1, %c0_i32_0 : i32
    scf.if %2 {
      %cst_49 = arith.constant 0.000000e+00 : f32
      %94 = vector.broadcast %cst_49 : f32 to vector<2x128xf32>
      %c0_50 = arith.constant 0 : index
      %c0_51 = arith.constant 0 : index
      %95 = vector.load %arg9[%c0_50, %c0_51] : memref<2x128xf32, #tpu.memory_space<vmem>>, vector<2x128xf32>
      tpu.vector_store %arg9[%c0_50, %c0_51], %94 {strides = array<i32>} : memref<2x128xf32, #tpu.memory_space<vmem>>, vector<2x128xf32>,
    } else {
    }
    %c0 = arith.constant 0 : index
    %c0_1 = arith.constant 0 : index
    %3 = vector.load %arg2[%c0, %c0_1] : memref<2x128xf32, #tpu.memory_space<vmem>>, vector<1x128xf32>
    %c1 = arith.constant 1 : index
    %c0_2 = arith.constant 0 : index
    %4 = vector.load %arg2[%c1, %c0_2] : memref<2x128xf32, #tpu.memory_space<vmem>>, vector<1x128xf32>
    %c16_i32 = arith.constant 16 : i32
    %5 = arith.muli %arg0, %c16_i32 : i32
    %6 = tpu.iota {dimensions = array<i32: 0>} : vector<16x1xi32>
    %7 = vector.broadcast %5 : i32 to vector<16x1xi32>
    %8 = arith.addi %6, %7 : vector<16x1xi32>
    %c60_i32 = arith.constant 60 : i32
    %9 = vector.broadcast %c60_i32 : i32 to vector<16x1xi32>
    %10 = arith.cmpi slt, %8, %9 : vector<16x1xi32>
    %cst = arith.constant 0.000000e+00 : f32
    %11 = vector.broadcast %cst : f32 to vector<1x128xf32>
    %cst_3 = arith.constant 0.000000e+00 : f32
    %12 = vector.broadcast %cst_3 : f32 to vector<1x128xf32>
    %c0_4 = arith.constant 0 : index
    %c0_5 = arith.constant 0 : index
    %c0_6 = arith.constant 0 : index
    %13 = vector.load %arg1[%c0_4, %c0_5, %c0_6] : memref<2x16x128xbf16, #tpu.memory_space<vmem>>, vector<1x16x128xbf16>
    %14 = vector.shape_cast %13 : vector<1x16x128xbf16> to vector<16x128xbf16>
    %15 = arith.extf %14 : vector<16x128xbf16> to vector<16x128xf32>
    %16 = vector.broadcast %3 : vector<1x128xf32> to vector<16x128xf32>
    %17 = arith.mulf %15, %16 : vector<16x128xf32>
    %18 = vector.broadcast %4 : vector<1x128xf32> to vector<16x128xf32>
    %19 = arith.addf %17, %18 : vector<16x128xf32>
    %20 = arith.truncf %19 : vector<16x128xf32> to vector<16x128xbf16>
    %cst_7 = arith.constant 0.000000e+00 : f32
    %21 = vector.broadcast %cst_7 : f32 to vector<16x128xf32>
    %c0_8 = arith.constant 0 : index
    %c0_9 = arith.constant 0 : index
    %c0_10 = arith.constant 0 : index
    %22 = vector.load %arg3[%c0_8, %c0_9, %c0_10] : memref<1x128x128xbf16, #tpu.memory_space<vmem>>, vector<1x128x128xbf16>
    %23 = vector.shape_cast %22 : vector<1x128x128xbf16> to vector<128x128xbf16>
    %cst_11 = arith.constant dense<0.000000e+00> : vector<16x128xf32>
    %24 = tpu.matmul %20, %23, %cst_11 {dimension_numbers = #tpu.dot_dimension_numbers<[1], [0], [0], [1], [0, 0, 1, 1], [], []>} : vector<16x128xbf16>, vector<128x128xbf16>, vector<16x128xf32> -> vector<16x128xf32>
    %25 = arith.addf %21, %24 : vector<16x128xf32>
    %c0_12 = arith.constant 0 : index
    %c0_13 = arith.constant 0 : index
    %26 = vector.load %arg4[%c0_12, %c0_13] : memref<1x128xf32, #tpu.memory_space<vmem>>, vector<1x128xf32>
    %27 = vector.broadcast %26 : vector<1x128xf32> to vector<16x128xf32>
    %28 = arith.addf %25, %27 : vector<16x128xf32>
    %cst_14 = arith.constant 0.000000e+00 : f32
    %29 = vector.broadcast %cst_14 : f32 to vector<16x128xf32>
    %30 = arith.cmpf oge, %28, %29 : vector<16x128xf32>
    %cst_15 = arith.constant 0.00999999977 : f32
    %31 = vector.broadcast %cst_15 : f32 to vector<16x128xf32>
    %32 = arith.mulf %31, %28 : vector<16x128xf32>
    %33 = arith.select %30, %28, %32 : vector<16x128xi1>, vector<16x128xf32>
    %34 = arith.truncf %33 : vector<16x128xf32> to vector<16x128xbf16>
    %c0_16 = arith.constant 0 : index
    %c0_17 = arith.constant 0 : index
    %c0_18 = arith.constant 0 : index
    %35 = vector.load %arg7[%c0_16, %c0_17, %c0_18] : memref<2x16x128xbf16, #tpu.memory_space<vmem>>, vector<1x16x128xbf16>
    %36 = vector.shape_cast %35 : vector<1x16x128xbf16> to vector<16x128xbf16>
    %37 = vector.shape_cast %34 : vector<16x128xbf16> to vector<1x16x128xbf16>
    tpu.vector_store %arg7[%c0_16, %c0_17, %c0_18], %37 {strides = array<i32>} : memref<2x16x128xbf16, #tpu.memory_space<vmem>>, vector<1x16x128xbf16>,
    %cst_19 = arith.constant 0.000000e+00 : f32
    %38 = vector.shape_cast %10 : vector<16x1xi1> to vector<16x1xi1>
    %39 = vector.broadcast %38 : vector<16x1xi1> to vector<16x128xi1>
    %40 = vector.broadcast %cst_19 : f32 to vector<16x128xf32>
    %41 = arith.select %39, %33, %40 : vector<16x128xi1>, vector<16x128xf32>
    %cst_20 = arith.constant dense<0.000000e+00> : vector<128xf32>
    %42 = vector.multi_reduction <add>, %41, %cst_20 [0] : vector<16x128xf32> to vector<128xf32>
    %43 = vector.shape_cast %42 : vector<128xf32> to vector<1x128xf32>
    %44 = arith.addf %11, %43 : vector<1x128xf32>
    %45 = arith.mulf %41, %41 : vector<16x128xf32>
    %cst_21 = arith.constant dense<0.000000e+00> : vector<128xf32>
    %46 = vector.multi_reduction <add>, %45, %cst_21 [0] : vector<16x128xf32> to vector<128xf32>
    %47 = vector.shape_cast %46 : vector<128xf32> to vector<1x128xf32>
    %48 = arith.addf %12, %47 : vector<1x128xf32>
    %c1_22 = arith.constant 1 : index
    %c0_23 = arith.constant 0 : index
    %c0_24 = arith.constant 0 : index
    %49 = vector.load %arg1[%c1_22, %c0_23, %c0_24] : memref<2x16x128xbf16, #tpu.memory_space<vmem>>, vector<1x16x128xbf16>
    %50 = vector.shape_cast %49 : vector<1x16x128xbf16> to vector<16x128xbf16>
    %51 = arith.extf %50 : vector<16x128xbf16> to vector<16x128xf32>
    %52 = vector.broadcast %3 : vector<1x128xf32> to vector<16x128xf32>
    %53 = arith.mulf %51, %52 : vector<16x128xf32>
    %54 = vector.broadcast %4 : vector<1x128xf32> to vector<16x128xf32>
    %55 = arith.addf %53, %54 : vector<16x128xf32>
    %56 = arith.truncf %55 : vector<16x128xf32> to vector<16x128xbf16>
    %cst_25 = arith.constant 0.000000e+00 : f32
    %57 = vector.broadcast %cst_25 : f32 to vector<16x128xf32>
    %c0_26 = arith.constant 0 : index
    %c0_27 = arith.constant 0 : index
    %c0_28 = arith.constant 0 : index
    %58 = vector.load %arg3[%c0_26, %c0_27, %c0_28] : memref<1x128x128xbf16, #tpu.memory_space<vmem>>, vector<1x128x128xbf16>
    %59 = vector.shape_cast %58 : vector<1x128x128xbf16> to vector<128x128xbf16>
    %cst_29 = arith.constant dense<0.000000e+00> : vector<16x128xf32>
    %60 = tpu.matmul %56, %59, %cst_29 {dimension_numbers = #tpu.dot_dimension_numbers<[1], [0], [0], [1], [0, 0, 1, 1], [], []>} : vector<16x128xbf16>, vector<128x128xbf16>, vector<16x128xf32> -> vector<16x128xf32>
    %61 = arith.addf %57, %60 : vector<16x128xf32>
    %c0_30 = arith.constant 0 : index
    %c0_31 = arith.constant 0 : index
    %62 = vector.load %arg4[%c0_30, %c0_31] : memref<1x128xf32, #tpu.memory_space<vmem>>, vector<1x128xf32>
    %63 = vector.broadcast %62 : vector<1x128xf32> to vector<16x128xf32>
    %64 = arith.addf %61, %63 : vector<16x128xf32>
    %cst_32 = arith.constant 0.000000e+00 : f32
    %65 = vector.broadcast %cst_32 : f32 to vector<16x128xf32>
    %66 = arith.cmpf oge, %64, %65 : vector<16x128xf32>
    %cst_33 = arith.constant 0.00999999977 : f32
    %67 = vector.broadcast %cst_33 : f32 to vector<16x128xf32>
    %68 = arith.mulf %67, %64 : vector<16x128xf32>
    %69 = arith.select %66, %64, %68 : vector<16x128xi1>, vector<16x128xf32>
    %70 = arith.truncf %69 : vector<16x128xf32> to vector<16x128xbf16>
    %c1_34 = arith.constant 1 : index
    %c0_35 = arith.constant 0 : index
    %c0_36 = arith.constant 0 : index
    %71 = vector.load %arg7[%c1_34, %c0_35, %c0_36] : memref<2x16x128xbf16, #tpu.memory_space<vmem>>, vector<1x16x128xbf16>
    %72 = vector.shape_cast %71 : vector<1x16x128xbf16> to vector<16x128xbf16>
    %73 = vector.shape_cast %70 : vector<16x128xbf16> to vector<1x16x128xbf16>
    tpu.vector_store %arg7[%c1_34, %c0_35, %c0_36], %73 {strides = array<i32>} : memref<2x16x128xbf16, #tpu.memory_space<vmem>>, vector<1x16x128xbf16>,
    %cst_37 = arith.constant 0.000000e+00 : f32
    %74 = vector.shape_cast %10 : vector<16x1xi1> to vector<16x1xi1>
    %75 = vector.broadcast %74 : vector<16x1xi1> to vector<16x128xi1>
    %76 = vector.broadcast %cst_37 : f32 to vector<16x128xf32>
    %77 = arith.select %75, %69, %76 : vector<16x128xi1>, vector<16x128xf32>
    %cst_38 = arith.constant dense<0.000000e+00> : vector<128xf32>
    %78 = vector.multi_reduction <add>, %77, %cst_38 [0] : vector<16x128xf32> to vector<128xf32>
    %79 = vector.shape_cast %78 : vector<128xf32> to vector<1x128xf32>
    %80 = arith.addf %44, %79 : vector<1x128xf32>
    %81 = arith.mulf %77, %77 : vector<16x128xf32>
    %cst_39 = arith.constant dense<0.000000e+00> : vector<128xf32>
    %82 = vector.multi_reduction <add>, %81, %cst_39 [0] : vector<16x128xf32> to vector<128xf32>
    %83 = vector.shape_cast %82 : vector<128xf32> to vector<1x128xf32>
    %84 = arith.addf %48, %83 : vector<1x128xf32>
    %c0_40 = arith.constant 0 : index
    %c0_41 = arith.constant 0 : index
    %85 = vector.load %arg9[%c0_40, %c0_41] : memref<2x128xf32, #tpu.memory_space<vmem>>, vector<1x128xf32>
    %86 = arith.addf %85, %80 : vector<1x128xf32>
    %c0_42 = arith.constant 0 : index
    %c0_43 = arith.constant 0 : index
    %87 = vector.load %arg9[%c0_42, %c0_43] : memref<2x128xf32, #tpu.memory_space<vmem>>, vector<1x128xf32>
    tpu.vector_store %arg9[%c0_42, %c0_43], %86 {strides = array<i32>} : memref<2x128xf32, #tpu.memory_space<vmem>>, vector<1x128xf32>,
    %c1_44 = arith.constant 1 : index
    %c0_45 = arith.constant 0 : index
    %88 = vector.load %arg9[%c1_44, %c0_45] : memref<2x128xf32, #tpu.memory_space<vmem>>, vector<1x128xf32>
    %89 = arith.addf %88, %84 : vector<1x128xf32>
    %c1_46 = arith.constant 1 : index
    %c0_47 = arith.constant 0 : index
    %90 = vector.load %arg9[%c1_46, %c0_47] : memref<2x128xf32, #tpu.memory_space<vmem>>, vector<1x128xf32>
    tpu.vector_store %arg9[%c1_46, %c0_47], %89 {strides = array<i32>} : memref<2x128xf32, #tpu.memory_space<vmem>>, vector<1x128xf32>,
    %c3_i32 = arith.constant 3 : i32
    %91 = arith.cmpi eq, %arg0, %c3_i32 : i32
    %92 = arith.extui %91 : i1 to i32
    %c0_i32_48 = arith.constant 0 : i32
    %93 = arith.cmpi ne, %92, %c0_i32_48 : i32
    scf.if %93 {
      %c0_49 = arith.constant 0 : index
      %c0_50 = arith.constant 0 : index
      %94 = vector.load %arg9[%c0_49, %c0_50] : memref<2x128xf32, #tpu.memory_space<vmem>>, vector<1x128xf32>
      %cst_51 = arith.constant 0.00833333377 : f32
      %95 = vector.broadcast %cst_51 : f32 to vector<1x128xf32>
      %96 = arith.mulf %94, %95 : vector<1x128xf32>
      %c1_52 = arith.constant 1 : index
      %c0_53 = arith.constant 0 : index
      %97 = vector.load %arg9[%c1_52, %c0_53] : memref<2x128xf32, #tpu.memory_space<vmem>>, vector<1x128xf32>
      %cst_54 = arith.constant 0.00833333377 : f32
      %98 = vector.broadcast %cst_54 : f32 to vector<1x128xf32>
      %99 = arith.mulf %97, %98 : vector<1x128xf32>
      %100 = arith.mulf %96, %96 : vector<1x128xf32>
      %101 = arith.subf %99, %100 : vector<1x128xf32>
      %cst_55 = arith.constant 0.000000e+00 : f32
      %102 = vector.broadcast %cst_55 : f32 to vector<1x128xf32>
      %103 = arith.maximumf %101, %102 : vector<1x128xf32>
      %c0_56 = arith.constant 0 : index
      %c0_57 = arith.constant 0 : index
      %104 = vector.load %arg5[%c0_56, %c0_57] : memref<1x128xf32, #tpu.memory_space<vmem>>, vector<1x128xf32>
      %cst_58 = arith.constant 9.99999974E-6 : f32
      %105 = vector.broadcast %cst_58 : f32 to vector<1x128xf32>
      %106 = arith.addf %103, %105 : vector<1x128xf32>
      %107 = math.rsqrt %106 : vector<1x128xf32>
      %108 = arith.mulf %104, %107 : vector<1x128xf32>
      %c0_59 = arith.constant 0 : index
      %c0_60 = arith.constant 0 : index
      %109 = vector.load %arg8[%c0_59, %c0_60] : memref<2x128xf32, #tpu.memory_space<vmem>>, vector<1x128xf32>
      tpu.vector_store %arg8[%c0_59, %c0_60], %108 {strides = array<i32>} : memref<2x128xf32, #tpu.memory_space<vmem>>, vector<1x128xf32>,
      %c0_61 = arith.constant 0 : index
      %c0_62 = arith.constant 0 : index
      %110 = vector.load %arg6[%c0_61, %c0_62] : memref<1x128xf32, #tpu.memory_space<vmem>>, vector<1x128xf32>
      %111 = arith.mulf %96, %108 : vector<1x128xf32>
      %112 = arith.subf %110, %111 : vector<1x128xf32>
      %c1_63 = arith.constant 1 : index
      %c0_64 = arith.constant 0 : index
      %113 = vector.load %arg8[%c1_63, %c0_64] : memref<2x128xf32, #tpu.memory_space<vmem>>, vector<1x128xf32>
      tpu.vector_store %arg8[%c1_63, %c0_64], %112 {strides = array<i32>} : memref<2x128xf32, #tpu.memory_space<vmem>>, vector<1x128xf32>,
    } else {
    }
    return
  }
  func.func @transform_0(%arg0: i32) -> (i32, i32, i32) {
    %c0_i32 = arith.constant 0 : i32
    %c0_i32_0 = arith.constant 0 : i32
    %c0_i32_1 = arith.constant 0 : i32
    return %c0_i32, %arg0, %c0_i32_0 : i32, i32, i32
  }
  func.func @transform_1(%arg0: i32) -> (i32, i32) {
    %c0_i32 = arith.constant 0 : i32
    %c0_i32_0 = arith.constant 0 : i32
    %c0_i32_1 = arith.constant 0 : i32
    return %c0_i32, %c0_i32_0 : i32, i32
  }
  func.func @transform_2(%arg0: i32) -> (i32, i32, i32) {
    %c0_i32 = arith.constant 0 : i32
    %c0_i32_0 = arith.constant 0 : i32
    %c0_i32_1 = arith.constant 0 : i32
    %c0_i32_2 = arith.constant 0 : i32
    return %c0_i32, %c0_i32_0, %c0_i32_1 : i32, i32, i32
  }
  func.func @transform_3(%arg0: i32) -> (i32, i32) {
    %c0_i32 = arith.constant 0 : i32
    %c0_i32_0 = arith.constant 0 : i32
    %c0_i32_1 = arith.constant 0 : i32
    return %c0_i32, %c0_i32_0 : i32, i32
  }
  func.func @transform_4(%arg0: i32) -> (i32, i32) {
    %c0_i32 = arith.constant 0 : i32
    %c0_i32_0 = arith.constant 0 : i32
    %c0_i32_1 = arith.constant 0 : i32
    return %c0_i32, %c0_i32_0 : i32, i32
  }
  func.func @transform_5(%arg0: i32) -> (i32, i32) {
    %c0_i32 = arith.constant 0 : i32
    %c0_i32_0 = arith.constant 0 : i32
    %c0_i32_1 = arith.constant 0 : i32
    return %c0_i32, %c0_i32_0 : i32, i32
  }
  func.func @transform_6(%arg0: i32) -> (i32, i32, i32) {
    %c0_i32 = arith.constant 0 : i32
    %c0_i32_0 = arith.constant 0 : i32
    %c0_i32_1 = arith.constant 0 : i32
    return %c0_i32, %arg0, %c0_i32_0 : i32, i32, i32
  }
  func.func @transform_7(%arg0: i32) -> (i32, i32) {
    %c0_i32 = arith.constant 0 : i32
    %c0_i32_0 = arith.constant 0 : i32
    %c0_i32_1 = arith.constant 0 : i32
    return %c0_i32, %c0_i32_0 : i32, i32
  }
}

</mosaic_0001>

<bundles_post_ra>
// kernel: tpu_custom_call.1
= control target key start
LH: loop header
LB: loop body
LE: loop exit
PB: predicated region body
PF: predicated region fallthrough
CT: control target
= control target key end

     0   :  { %s1498_s0 = inlined_call_operand.hbm [shape: bf16[2,80,128], index: 0, kind: input, shape index: {}]   ;;  %s1499_s1 = inlined_call_operand.vmem [shape: f32[2,128], index: 1, kind: input, shape index: {}]   ;;  %s1500_s2 = inlined_call_operand.hbm [shape: bf16[1,128,128], index: 2, kind: input, shape index: {}]   ;;  %s1501_s3 = inlined_call_operand.vmem [shape: f32[1,128], index: 3, kind: input, shape index: {}]   ;;  %s1502_s4 = inlined_call_operand.vmem [shape: f32[1,128], index: 4, kind: input, shape index: {}]   ;;  %s1503_s5 = inlined_call_operand.vmem [shape: f32[1,128], index: 5, kind: input, shape index: {}]   ;;  %s1504_s6 = inlined_call_operand.hbm [shape: bf16[2,80,128], index: 6, kind: output, shape index: {0}]   ;;  %s1505_s7 = inlined_call_operand.hbm [shape: f32[2,128], index: 7, kind: output, shape index: {1}]  }
   0x1   :  { %1513 = sst [smem:[#allocation22_spill]] %s1500_s2 }
   0x2   :  { %13 = vsyncpa [#allocation4], 0 }
   0x3   :  { %15 = vsyncpa [#allocation4 + $0x1], 0 }
   0x4   :  { %16 = vsyncpa [#allocation7], 0 }
   0x5   :  { %17 = vsyncpa [#allocation5], 0 }
   0x6   :  { %19 = vsyncpa [#allocation5 + $0x1], 0 }
   0x7   :  { %20 = vsyncpa [#allocation10], 0  ;;  %s1262_s24 = smov 0   ;;  %s1264_s25 = smov 0  }
   0x8   :  { %s1266_s26 = smov 0   ;;  %s1268_s27 = smov 0  }
   0x9 LB: > { %1514 = sst [smem:[#allocation20_spill]] %s1196_s26  ;;  %s1283_s28 = sadd.s32 4294967295, %s1200_s27   ;;  %s1200_s27 = sphi %s1268_s27, %s1540_s27   ;;  %s1196_s26 = sphi %s1266_s26, %s1537_s26   ;;  %s1192_s25 = sphi %s1264_s25, %s1539_s25   ;;  %s1188_s24 = sphi %s1262_s24, %s1538_s24  }
   0xa   : > { %s857_s29 = sadd.s32 4294967294, %s1200_s27   ;;  %s1287_s30 = sadd.s32 1, %s1200_s27  }
   0xb   : > { %s33_s8 = sadd.s32 1, %s1196_s26  ;;  %s30_s9 = ssub.s32 %s1200_s27, %s1287_s30 }
   0xc   : > { %p40_p0 = scmp.ne.s32.totalorder %s1196_s26, %s1192_s25  ;;  %p31_p1 = scmp.eq.s32.totalorder %s30_s9, 0 }
   0xd   : > { %p41_p2 = scmp.eq.s32.totalorder %s1200_s27, 0  ;;  %p46_p3 = scmp.ne.s32.totalorder %s1192_s25, %s1188_s24 }
   0xe   : > { %p1507_p4 = scmp.eq.s32.totalorder %s1283_s28, 0  ;;  %p1506_p7 = scmp.eq.s32.totalorder %s1283_s28, 3 }
   0xf   : > { %s1299_s10 = scalar_select %p31_p1, %s1196_s26, %s33_s8  }
  0x10   : > { %p1301_p5 = por %p41_p2, %p40_p0  ;;  %p1307_p6 = por %p1507_p4, %p46_p3 }
  0x11   : > { %1515 = sst [smem:[#allocation21_spill]] %s1299_s10  ;;  %p181_p8 = scmp.eq.s32.totalorder %s857_s29, 3 }
  0x12   : > { %s1516_s11 = scalar_select %p1301_p5, 1, 0 }
  0x13   : > { %s1517_s12 = scalar_select %p1307_p6, 1, 0 }
  0x14   : > { %p858_p9 = scmp.ge.s32.totalorder %s1200_s27, 1  ;;  %p209_p10 = scmp.lt.s32.totalorder %s1200_s27, 5 }
  0x15   : > { %p1316_p11 = por %p1506_p7, %p40_p0  ;;  %p1320_p12 = por %p181_p8, %p46_p3 }
  0x16   : > { %p1324_p13 = pnand %p858_p9, %p209_p10  ;;  %s1202_s16 = smov [#allocation6]  }
  0x17   : > { %s1518_s13 = scalar_select %p1316_p11, 1, 0 }
  0x18   : > { %s1519_s14 = scalar_select %p1320_p12, 1, 0 }
  0x19   : > { %s1520_s15 = scalar_select %p1324_p13, 1, 0 }
  0x1a   : > { %p1017_p2 = pneg %p1324_p13  ;;  %s224_s17 = sshll.u32 %s1202_s16, 4  ;;  %s225_s17 = int_to_ptr.vmem [resolvable:$true] %s224_s17 }
  0x1b   : > { %s1522_s2 = sld [smem:[#allocation22_spill]] }
  0x1c   : > { %p1333_p0 = pnand %p1017_p2, %p1507_p4 }
  0x1e   : > { %p1102_p8 = pneg %p1333_p0 }
  0x21   : > { %s1100_s21 = scalar_lea.hbm %s1522_s2, 1024 }
  0x22   : > { %p1101_p3 = scmp.ne.s32.totalorder %s1522_s2, %s1100_s21  ;;  %p1107_p2 = scmp.lt.u32.totalorder %s1100_s21, %s1522_s2 }
  0x24   : > { %p1103_p9 = pnand %p1102_p8, %p1101_p3 }
  0x26   : > { %p1104_p10 = pneg %p1103_p9 }
  0x28   : > { %p1109_p7 = pnand %p1107_p2, %p1104_p10 }
  0x2a   : > { %1112 = shalt.err (!%p1109_p7)
}
  0x2b   : > { %s1113_s9 = scalar_lea.vmem %s225_s17, 1024  ;;  %p1121_p11 = scmp.lt.s32.totalorder %s225_s17, %s225_s17 }
  0x2c   : > { %p1114_p1 = scmp.ne.s32.totalorder %s225_s17, %s1113_s9  ;;  %p1122_p6 = scmp.lt.s32.totalorder %s1113_s9, %s1113_s9 }
  0x2e   : > { %p1116_p4 = pnand %p1114_p1, %p1102_p8  ;;  %p1123_p13 = por %p1122_p6, %p1121_p11 }
  0x30   : > { %p1117_p12 = pneg %p1116_p4 }
  0x32   : > { %p1124_p5 = pnand %p1123_p13, %p1117_p12 }
  0x34   : > { %1127 = shalt.err (!%p1124_p5)
}
  0x35   : > { %s1203_s16 = smov 64   ;;  %s1204_s19 = smov 4  }
  0x36   : > { %1020 = dma.hbm_to_vmem [thread:$0]  (!%p1333_p0), %s1522_s2, 1024, %s225_s17, [#allocation7], %s1203_s16, %s1203_s16, %s1204_s19  }
  0x37   : > { %p860_p3 = scmp.ge.s32.totalorder %s1200_s27, 4 }
  0x39   : > { %243 = sbr.rel (%p860_p3) target bundleno = 79 (0x4f), region = 36 }
  0x40   : > { %s247_s21 = sand.u32 1, %s1196_s26   ;;  %s908_s23 = sshll.u32 %s1200_s27, 7 }
  0x41   : > { %s861_s29 = sshll.u32 %s247_s21, 4  ;;  %s257_s9 = scalar_lea.hbm %s1498_s0, %s908_s23 }
  0x42   : > { %p1523_p4 = scmp.ne.s32.totalorder %s1516_s11, 0  ;;  %s251_s16 = scalar_lea.vmem [#allocation3], %s861_s29 }
  0x43   : > { %s270_s19 = sshll.u32 %s251_s16, 4  ;;  %s1205_s22 = smov 640   ;;  %s271_s19 = int_to_ptr.vmem [resolvable:$true] %s270_s19 }
  0x44   : > { %s994_s17 = scalar_select %p1523_p4, [#allocation0], [#allocation15] }
  0x45   : > { %995 = sst [smem:[#allocation12]] (%p1523_p4), %s1205_s22  ;;  %s1206_s2 = smov 128  }
  0x46   : > { %s262_s20 = sld [smem:[%s994_s17]]   ;;  %s1207_s10 = smov 2  }
  0x47   : > { %996 = sst [smem:[#allocation12 + $0x1]] (%p1523_p4), %s1206_s2  ;;  %s1208_s26 = smov 64  }
  0x48   : > { %997 = sst [smem:[#allocation12 + $0x2]] (%p1523_p4), %s1207_s10  ;;  %s1209_s29 = smov 4  }
  0x49   : > { %998 = sst [smem:[#allocation12 + $0x3]] (%p1523_p4), %s1208_s26  ;;  %s248_s18 = scalar_lea.sflag [#allocation4], %s247_s21 }
  0x4a   : > { %999 = sst [smem:[#allocation12 + $0x4]] (%p1523_p4), %s1208_s26  ;;  %s1210_s17 = smov [#allocation11]  }
  0x4b   : > { %1000 = sst [smem:[#allocation12 + $0x5]] (%p1523_p4), %s1209_s29 }
  0x4c   : > { %s864_s23 = sshll.u32 %s262_s20, 26 }
  0x4d   : > { %s865_s8 = sadd.s32 134217728, %s864_s23 }
  0x4e   : > { %1001 = dma.general (%p1523_p4), %s257_s9, 256, %s271_s19, %s248_s18, %s1210_s17, [#allocation12], %s865_s8, 0  }
  0x4f PF: > { %p1524_p5 = scmp.ne.s32.totalorder %s1520_s15, 0 }
  0x50   : > { %s1378_s2 = sand.u32 (!%p1524_p5), 1, %s1192_s25   ;;  %p1525_p6 = scmp.ne.s32.totalorder (!%p1524_p5), %s1517_s12, 0 }
  0x51   : > { %295 = sbr.rel (%p1524_p5) target bundleno = 447 (0x1bf), region = 44  ;;  %s867_s26 = sshll.u32 (!%p1524_p5), %s1378_s2, 4 }
  0x52   : > { %s298_s10 = scalar_lea.sflag (!%p1524_p5), [#allocation4], %s1378_s2  ;;  %s1382_s16 = scalar_lea.vmem (!%p1524_p5), [#allocation3], %s867_s26 }
  0x58   : > { %1171 = dma.done.wait (%p1525_p6), %s298_s10, 256  }
  0x59   : > { %1173 = vsyncadd (%p1525_p6), %s298_s10, 4294967040  ;;  %p1526_p7 = scmp.eq.s32.totalorder %s1283_s28, 0 }
  0x5b   : > { %1175 = dma.done.wait (%p1526_p7), [#allocation7], 1024   ;;  %p1527_p11 = pmov %p1526_p7 }
  0x5c   : > { %s1392_s11 = scalar_lea.vmem [#allocation8], %s867_s26  ;;  %p1528_p12 = scmp.ne.s32.totalorder %s1283_s28, 0 }
  0x5d   : > { %1177 = vsyncadd (%p1527_p11), [#allocation7], 4294966272  ;;  %v1211_v0 = vmov (!%p1528_p12), 0.0  }
  0x5e   : > { %342 = sbr.rel (%p1528_p12) target bundleno = 101 (0x65), region = 56  ;;  %343 = vst [vmem:[#allocation2] sm:$0x3] (!%p1528_p12), %v1211_v0 }
  0x65 PF: > { %v1082_v1 = vld [vmem:[#allocation6] sm:$0xff]   ;;  %v1212_v2 = vmov 0.0   ;;  %v1084_v4 = vld [vmem:[#allocation6 + $0x8] sm:$0xff]   ;;  %vm1213_vm0 = vmmov 0   ;;  %v1086_v6 = vld [vmem:[#allocation6 + $0x10] sm:$0xff]   ;;  %v347_v36 = vlaneseq  ;;  %s871_s19 = sshll.u32 %s1283_s28, 4 }
  0x66   : > { %952 = vmatprep.subr.bf16.mxu0 %v1212_v2  ;;  %972 = vmatprep.subr.bf16.mxu1 %v1212_v2  ;;  %v1083_v3 = vld [vmem:[#allocation6] sm:$0xff]   ;;  %v1085_v5 = vld [vmem:[#allocation6 + $0x8] sm:$0xff]   ;;  %v1087_v7 = vld [vmem:[#allocation6 + $0x10] sm:$0xff]   ;;  %v350_v38 = vstv %s871_s19  ;;  %p900_p13 = scmp.ne.s32.totalorder %s1283_s28, 3 }
  0x67   : > { %953 = vmatpush3.bf16.msra.mxu0 %v1082_v1  ;;  %968 = vmatprep.mubr.msk.bf16.mxu0 %vm1213_vm0, %v1212_v2  ;;  %v1088_v8 = vld [vmem:[#allocation6 + $0x18] sm:$0xff]   ;;  %v1090_v10 = vld [vmem:[#allocation6 + $0x20] sm:$0xff]   ;;  %v1092_v16 = vld [vmem:[#allocation6 + $0x28] sm:$0xff]   ;;  %v348_v37 = vshrl.u32 %v347_v36, 7 }
  0x68   : > { %973 = vmatpush3.bf16.msra.mxu1 %v1083_v3  ;;  %954 = vmatprep.subr.bf16.mxu0 %v1212_v2  ;;  %v1089_v9 = vld [vmem:[#allocation6 + $0x18] sm:$0xff]   ;;  %v1091_v11 = vld [vmem:[#allocation6 + $0x20] sm:$0xff]   ;;  %v1093_v20 = vld [vmem:[#allocation6 + $0x28] sm:$0xff]  }
  0x69   : > { %974 = vmatprep.subr.bf16.mxu1 %v1212_v2  ;;  %988 = vmatprep.mubr.msk.bf16.mxu1 %vm1213_vm0, %v1212_v2  ;;  %v915_v12 = vld [vmem:[%s1382_s16] sm:$0xff]   ;;  %v932_v15 = vld [vmem:[%s1382_s16 + $0x8] sm:$0xff]   ;;  %v349_v39 = vadd.s32 8, %v348_v37  ;;  %v351_v41 = vadd.s32 %v350_v38, %v348_v37 }
  0x6a   : > { %v916_v13 = vunpack.c.l.bf16 %v915_v12  ;;  %v917_v14 = vunpack.c.h.bf16 %v915_v12  ;;  %v872_v17 = vld [vmem:[%s1499_s1] ss:$0 sm:$0xff]  ;;  %v925_v18 = vunpack.c.l.bf16 %v932_v15  ;;  %v926_v19 = vunpack.c.h.bf16 %v932_v15  ;;  %v1094_v23 = vld [vmem:[#allocation6 + $0x30] sm:$0xff]   ;;  %v873_v24 = vld [vmem:[%s1499_s1 + $0x1] ss:$0 sm:$0xff] }
  0x6b   : > { %955 = vmatpush3.bf16.msra.mxu0 %v1084_v4  ;;  %v1095_v27 = vld [vmem:[#allocation6 + $0x30] sm:$0xff]   ;;  %v1096_v30 = vld [vmem:[#allocation6 + $0x38] sm:$0xff]   ;;  %v352_v46 = vadd.s32 %v350_v38, %v349_v39  ;;  %vm353_vm1 = vcmp.lt.s32.totalorder %v351_v41, 60 }
  0x6c   : > { %975 = vmatpush3.bf16.msra.mxu1 %v1085_v5  ;;  %956 = vmatprep.subr.bf16.mxu0 %v1212_v2  ;;  %v363_v21 = vmul.f32 %v916_v13, %v872_v17  ;;  %v364_v22 = vmul.f32 %v917_v14, %v872_v17  ;;  %v529_v25 = vmul.f32 %v925_v18, %v872_v17  ;;  %v1097_v33 = vld [vmem:[#allocation6 + $0x38] sm:$0xff]  }
  0x6d   : > { %976 = vmatprep.subr.bf16.mxu1 %v1212_v2  ;;  %v530_v26 = vmul.f32 %v926_v19, %v872_v17  ;;  %v874_v40 = vld [vmem:[%s1501_s3] ss:$0 sm:$0xff]  ;;  %vm354_vm4 = vcmp.lt.s32.totalorder %v352_v46, 60  ;;  %v686_v39 = vld [vmem:[#allocation2 + $0x1] sm:$0x1] }
  0x6e   : > { %v369_v28 = vadd.f32 %v873_v24, %v363_v21  ;;  %v370_v29 = vadd.f32 %v873_v24, %v364_v22  ;;  %v531_v31 = vadd.f32 %v873_v24, %v529_v25  ;;  %v683_v36 = vld [vmem:[#allocation2] sm:$0x1] }
  0x6f   : > { %957 = vmatpush3.bf16.msra.mxu0 %v1086_v6  ;;  %v532_v32 = vadd.f32 %v873_v24, %v530_v26 }
  0x70   : > { %977 = vmatpush3.bf16.msra.mxu1 %v1087_v7  ;;  %958 = vmatprep.subr.bf16.mxu0 %v1212_v2  ;;  %v371_v34 = vpack.c.bf16 %v370_v29, %v369_v28 }
  0x71   : > { %978 = vmatprep.subr.bf16.mxu1 %v1212_v2  ;;  %v533_v35 = vpack.c.bf16 %v532_v32, %v531_v31 }
  0x73   : > { %959 = vmatpush3.bf16.msra.mxu0 %v1088_v8 }
  0x74   : > { %979 = vmatpush3.bf16.msra.mxu1 %v1089_v9  ;;  %960 = vmatprep.subr.bf16.mxu0 %v1212_v2 }
  0x75   : > { %980 = vmatprep.subr.bf16.mxu1 %v1212_v2 }
  0x77   : > { %961 = vmatpush3.bf16.msra.mxu0 %v1090_v10 }
  0x78   : > { %981 = vmatpush3.bf16.msra.mxu1 %v1091_v11  ;;  %962 = vmatprep.subr.bf16.mxu0 %v1212_v2 }
  0x79   : > { %982 = vmatprep.subr.bf16.mxu1 %v1212_v2 }
  0x7b   : > { %963 = vmatpush3.bf16.msra.mxu0 %v1092_v16 }
  0x7c   : > { %983 = vmatpush3.bf16.msra.mxu1 %v1093_v20  ;;  %964 = vmatprep.subr.bf16.mxu0 %v1212_v2 }
  0x7d   : > { %984 = vmatprep.subr.bf16.mxu1 %v1212_v2 }
  0x7f   : > { %965 = vmatpush3.bf16.msra.mxu0 %v1094_v23 }
  0x80   : > { %985 = vmatpush3.bf16.msra.mxu1 %v1095_v27  ;;  %966 = vmatprep.subr.bf16.mxu0 %v1212_v2 }
  0x81   : > { %986 = vmatprep.subr.bf16.mxu1 %v1212_v2 }
  0x83   : > { %967 = vmatpush3.bf16.msra.mxu0 %v1096_v30 }
  0x84   : > { %987 = vmatpush3.bf16.msra.mxu1 %v1097_v33 }
  0x86   : > { %969 = vmatmul.mubr.bf16.vlgmr.msra.gmra.mrb[0].mxu0 %v371_v34 }
  0x87   : > { %989 = vmatmul.mubr.bf16.vlgmr.msra.gmra.mrb[0].mxu1 %v533_v35 }
 0x159   : > { %v477_v42 = vpop.f32.mrb[0].mxu0 }
 0x15a   : > { %v478_v43 = vadd.f32 %v874_v40, %v477_v42  ;;  %v639_v44 = vpop.f32.mrb[0].mxu1  ;;  %v970_v45 = vpop.f32.mrb[1].mxu0 }
 0x15b   : > { %v640_v47 = vadd.f32 %v874_v40, %v639_v44  ;;  %v990_v48 = vpop.f32.mrb[1].mxu1  ;;  %v480_v49 = vpop.f32.mrb[2].mxu0 }
 0x15c   : > { %vm484_vm2 = vcmp.ge.f32.partialorder %v478_v43, 0.0  ;;  %v486_v50 = vmul.f32 0.01, %v478_v43  ;;  %v481_v51 = vadd.f32 %v874_v40, %v480_v49  ;;  %v642_v52 = vpop.f32.mrb[2].mxu1  ;;  %v971_v53 = vpop.f32.mrb[3].mxu0 }
 0x15d   : > { %vm646_vm3 = vcmp.ge.f32.partialorder %v640_v47, 0.0  ;;  %v648_v54 = vmul.f32 0.01, %v640_v47  ;;  %v643_v55 = vadd.f32 %v874_v40, %v642_v52  ;;  %v991_v56 = vpop.f32.mrb[3].mxu1 }
 0x15e   : > { %v488_v57 = vsel %vm484_vm2, %v478_v43, %v486_v50  ;;  %vm485_vm5 = vcmp.ge.f32.partialorder %v481_v51, 0.0  ;;  %v487_v58 = vmul.f32 0.01, %v481_v51 }
 0x15f   : > { %v504_v59 = vsel %vm353_vm1, %v488_v57, 0.0  ;;  %v650_v60 = vsel %vm646_vm3, %v640_v47, %v648_v54  ;;  %vm647_vm6 = vcmp.ge.f32.partialorder %v643_v55, 0.0  ;;  %v649_v61 = vmul.f32 0.01, %v643_v55  ;;  %v705_v54 = vld [vmem:[%s1503_s5] sm:$0x1] (!%p900_p13) }
 0x160   : > { %v663_v62 = vsel %vm353_vm1, %v650_v60, 0.0  ;;  %v489_v63 = vsel %vm485_vm5, %v481_v51, %v487_v58  ;;  %v514_v0 = vmul.f32 %v504_v59, %v504_v59  ;;  %v700_v51 = vld [vmem:[%s1502_s4] sm:$0x1] (!%p900_p13) }
 0x161   : > { %v921_v1 = vpack.c.bf16 %v489_v63, %v488_v57  ;;  %v505_v2 = vsel %vm354_vm4, %v489_v63, 0.0  ;;  %v651_v3 = vsel %vm647_vm6, %v643_v55, %v649_v61  ;;  %v673_v8 = vmul.f32 %v663_v62, %v663_v62 }
 0x162   : > { %v506_v4 = vadd.f32 %v505_v2, %v504_v59  ;;  %v515_v5 = vmul.f32 %v505_v2, %v505_v2  ;;  %v930_v6 = vpack.c.bf16 %v651_v3, %v650_v60  ;;  %v664_v7 = vsel %vm354_vm4, %v651_v3, 0.0 }
 0x163   : > { %922 = vst [vmem:[%s1392_s11] sm:$0xff] %v921_v1   ;;  %v665_v9 = vadd.f32 %v664_v7, %v663_v62  ;;  %v674_v10 = vmul.f32 %v664_v7, %v664_v7 }
 0x164   : > { %v507_v11 = vrot.slane %v506_v4, 4  ;;  %v516_v12 = vadd.f32 %v515_v5, %v514_v0  ;;  %933 = vst [vmem:[%s1392_s11 + $0x8] sm:$0xff] %v930_v6  }
 0x165   : > { %v666_v13 = vrot.slane %v665_v9, 4  ;;  %v675_v14 = vadd.f32 %v674_v10, %v673_v8 }
 0x166   : > { %v508_v15 = vadd.f32 %v507_v11, %v506_v4  ;;  %v517_v16 = vrot.slane %v516_v12, 4 }
 0x167   : > { %v667_v17 = vadd.f32 %v666_v13, %v665_v9  ;;  %v676_v18 = vrot.slane %v675_v14, 4 }
 0x168   : > { %v509_v19 = vrot.slane %v508_v15, 2  ;;  %v518_v20 = vadd.f32 %v517_v16, %v516_v12 }
 0x169   : > { %v668_v21 = vrot.slane %v667_v17, 2  ;;  %v677_v22 = vadd.f32 %v676_v18, %v675_v14 }
 0x16a   : > { %v510_v23 = vadd.f32 %v509_v19, %v508_v15  ;;  %v519_v24 = vrot.slane %v518_v20, 2 }
 0x16b   : > { %v669_v25 = vadd.f32 %v668_v21, %v667_v17  ;;  %v678_v26 = vrot.slane %v677_v22, 2 }
 0x16c   : > { %v511_v27 = vrot.slane %v510_v23, 1  ;;  %v520_v28 = vadd.f32 %v519_v24, %v518_v20 }
 0x16d   : > { %v670_v29 = vrot.slane %v669_v25, 1  ;;  %v679_v30 = vadd.f32 %v678_v26, %v677_v22 }
 0x16e   : > { %v512_v31 = vadd.f32 %v511_v27, %v510_v23  ;;  %v521_v32 = vrot.slane %v520_v28, 1 }
 0x16f   : > { %v671_v33 = vadd.f32 %v670_v29, %v669_v25  ;;  %v680_v34 = vrot.slane %v679_v30, 1 }
 0x170   : > { %v522_v35 = vadd.f32 %v521_v32, %v520_v28 }
 0x171   : > { %v672_v37 = vadd.f32 %v671_v33, %v512_v31  ;;  %v681_v38 = vadd.f32 %v680_v34, %v679_v30  ;;  %692 = sbr.rel (%p900_p13) target bundleno = 409 (0x199), region = 60 }
 0x173   : > { %v682_v40 = vadd.f32 %v681_v38, %v522_v35  ;;  %v684_v41 = vadd.f32 %v683_v36, %v672_v37 }
 0x175   : > { %685 = vst [vmem:[#allocation2] sm:$0x1] %v684_v41  ;;  %v687_v42 = vadd.f32 %v686_v39, %v682_v40 }
 0x177   : > { %688 = vst [vmem:[#allocation2 + $0x1] sm:$0x1] %v687_v42 }
 0x17c   : > { %v693_v43 = vld [vmem:[#allocation2] sm:$0x1] }
 0x17d   : > { %v694_v45 = vmul.f32 0.008333334, %v693_v43 }
 0x17e   : > { %v695_v44 = vld [vmem:[#allocation2 + $0x1] sm:$0x1] }
 0x17f   : > { %v696_v46 = vmul.f32 0.008333334, %v695_v44  ;;  %v697_v47 = vmul.f32 %v694_v45, %v694_v45 }
 0x181   : > { %v698_v48 = vsub.f32 %v696_v46, %v697_v47 }
 0x183   : > { %v699_v49 = vmax.f32 %v698_v48, 0.0 }
 0x185   : > { %v701_v50 = vadd.f32 1e-05, %v699_v49 }
 0x187   : > { %1098 = vrsqrt.f32 %v701_v50 }
 0x191   : > { %v1099_v52 = vpop.eup %1098 }
 0x192   : > { %v703_v53 = vmul.f32 %v1099_v52, %v700_v51 }
 0x194   : > { %704 = vst [vmem:[#allocation9] sm:$0x1] %v703_v53  ;;  %v706_v55 = vmul.f32 %v703_v53, %v694_v45 }
 0x196   : > { %v707_v56 = vsub.f32 %v705_v54, %v706_v55 }
 0x198   : > { %708 = vst [vmem:[#allocation9 + $0x1] sm:$0x1] %v707_v56 }
 0x199 PF: > { %s710_s17 = scalar_lea.sflag [#allocation5], %s1378_s2 }
 0x19a   : > { %s913_s26 = sshll.u32 %s1283_s28, 7  ;;  %s739_s10 = sshll.u32 %s1392_s11, 4  ;;  %s740_s10 = int_to_ptr.vmem [resolvable:$true] %s739_s10 }
 0x19b   : > { %s722_s15 = scalar_lea.hbm %s1504_s6, %s913_s26  ;;  %s1214_s21 = smov 128  }
 0x19c   : > { %p1529_p1 = scmp.ne.s32.totalorder %s1518_s13, 0  ;;  %s1215_s2 = smov 640  }
 0x19d   : > { %s1216_s9 = smov 2   ;;  %s1217_s19 = smov 64  }
 0x19e   : > { %1005 = sst [smem:[#allocation14]] (%p1529_p1), %s1214_s21  ;;  %s1218_s11 = smov 4  }
 0x19f   : > { %1006 = sst [smem:[#allocation14 + $0x1]] (%p1529_p1), %s1215_s2  ;;  %s1219_s20 = smov [#allocation13]  }
 0x1a0   : > { %1007 = sst [smem:[#allocation14 + $0x2]] (%p1529_p1), %s1216_s9  ;;  %s1220_s22 = smov 0  }
 0x1a1   : > { %1008 = sst [smem:[#allocation14 + $0x3]] (%p1529_p1), %s1217_s19  ;;  %s1221_s23 = smov [#allocation9]  }
 0x1a2   : > { %1009 = sst [smem:[#allocation14 + $0x4]] (%p1529_p1), %s1217_s19  ;;  %s766_s29 = sshll.u32 %s1221_s23, 4  ;;  %s767_s29 = int_to_ptr.vmem [resolvable:$true] %s766_s29 }
 0x1a3   : > { %1010 = sst [smem:[#allocation14 + $0x5]] (%p1529_p1), %s1218_s11  ;;  %s1128_s8 = scalar_lea.vmem %s767_s29, 32 }
 0x1a4   : > { %1011 = dma.general (%p1529_p1), %s740_s10, 256, %s722_s15, %s710_s17, %s1219_s20, [#allocation14], %s1220_s22, 0  }
 0x1a5   : > { %p1129_p0 = scmp.ne.s32.totalorder %s767_s29, %s1128_s8  ;;  %p1530_p8 = scmp.eq.s32.totalorder %s1283_s28, 3 }
 0x1a6   : > { %p1135_p2 = scmp.lt.s32.totalorder %s767_s29, %s767_s29  ;;  %p1136_p3 = scmp.lt.s32.totalorder %s1128_s8, %s1128_s8 }
 0x1a7   : > { %p1130_p9 = pnand %p1129_p0, %p1530_p8 }
 0x1a8   : > { %p1137_p4 = por %p1136_p3, %p1135_p2 }
 0x1a9   : > { %p1131_p10 = pneg %p1130_p9 }
 0x1ab   : > { %p1138_p5 = pnand %p1137_p4, %p1131_p10 }
 0x1ad   : > { %1141 = shalt.err (!%p1138_p5)
}
 0x1ae   : > { %s1142_s13 = scalar_lea.hbm %s1505_s7, 32  ;;  %p1531_p7 = pmov %p1530_p8 }
 0x1af   : > { %p1143_p6 = scmp.ne.s32.totalorder %s1505_s7, %s1142_s13  ;;  %p1148_p13 = scmp.lt.u32.totalorder %s1142_s13, %s1505_s7 }
 0x1b1   : > { %p1144_p11 = pnand %p1143_p6, %p1531_p7 }
 0x1b3   : > { %p1145_p12 = pneg %p1144_p11 }
 0x1b5   : > { %p1150_p1 = pnand %p1148_p13, %p1145_p12 }
 0x1b7   : > { %1153 = shalt.err (!%p1150_p1)
}
 0x1b8   : > { %p1532_p0 = pmov %p1531_p7 }
 0x1ba   : > { %1013 = dma.vmem_to_hbm [thread:$0]  (%p1532_p0), %s767_s29, 32, %s1505_s7, [#allocation10]  }
 0x1bb   : > { %p1533_p8 = pmov %p1532_p0 }
 0x1bc   : > { %p1534_p9 = pmov %p1532_p0 }
 0x1bd   : > { %1179 = dma.done.wait (%p1533_p8), [#allocation10], 32  }
 0x1be   : > { %1181 = vsyncadd (%p1534_p9), [#allocation10], 4294967264 }
 0x1bf PF: > { %p1029_p10 = scmp.ge.s32.totalorder %s1200_s27, 2  ;;  %s782_s2 = sand.u32 1, %s1188_s24  }
 0x1c0   : > { %p1535_p2 = scmp.ne.s32.totalorder %s1519_s14, 0  ;;  %s783_s9 = scalar_lea.sflag [#allocation5], %s782_s2 }
 0x1c2   : > { %p1022_p3 = pnand %p1029_p10, %p1535_p2 }
 0x1c4   : > { %1183 = dma.done.wait (!%p1022_p3), %s783_s9, 256  }
 0x1c5   : > { %1185 = vsyncadd (!%p1022_p3), %s783_s9, 4294967040  ;;  %s1536_s19 = sld [smem:[#allocation20_spill]]  ;;  %s1537_s26 = sld [smem:[#allocation21_spill]] }
 0x1c6   : > { %p23_p4 = scmp.ge.s32.totalorder %s1287_s30, 6   ;;  %s1538_s24 = smov %s1192_s25 }
 0x1c7   : > { %s1540_s27 = smov %s1287_s30 }
 0x1c8   :  { %25 = sbr.rel (!%p23_p4) target bundleno = 9 (0x9), region = 121 }
 0x1cb   : > { %s1539_s25 = smov %s1536_s19 }
 0x1cf   :  { %788 = vsyncpa [#allocation4], 1 }
 0x1d0   :  { %790 = vsyncpa [#allocation4 + $0x1], 1 }
 0x1d1   :  { %791 = vsyncpa [#allocation7], 1 }
 0x1d2   :  { %792 = vsyncpa [#allocation5], 1 }
 0x1d3   :  { %794 = vsyncpa [#allocation5 + $0x1], 1 }
 0x1d4   :  { %795 = vsyncpa [#allocation10], 1 }

</bundles_post_ra>
